<compile_context>
chip_gen: v7x
topology: tpu7x:2x2x1
jax: 0.10.0
libtpu: 0.0.40
codegen_flags: <defaults>
</compile_context>

<pallas_src>
import functools

import jax
import jax.numpy as jnp
from jax.experimental import pallas as pl
from jax.experimental.pallas import tpu as pltpu


def _round_up(n, m):
    return ((n + m - 1) // m) * m


def _pick_vmem_limit():
    """Per-generation scoped-VMEM budget (v7x: 64 MiB physical; v5e/v6e: 128 MiB)."""
    try:
        kind = jax.devices()[0].device_kind.lower()
    except Exception:
        kind = ""
    if "v7" in kind:
        return 48 * 1024 * 1024
    return 96 * 1024 * 1024


def mlp_kernel(x_ref, w1_ref, b1_ref, w2_ref, b2_ref, w3_ref, b3_ref, out_ref):
    # x / weights are bf16 (MXU-native); accumulate in f32, bias add in f32, tanh on bf16
    # (cast is needed before the next matmul anyway; halves intermediate vreg pressure).
    x = x_ref[...]                                                         # (TB, Ip) bf16
    h1 = jnp.tanh(
        (jnp.dot(x, w1_ref[...], preferred_element_type=jnp.float32)
         + b1_ref[...]).astype(jnp.bfloat16))                              # (TB, Hp) bf16
    h2 = jnp.tanh(
        (jnp.dot(h1, w2_ref[...], preferred_element_type=jnp.float32)
         + b2_ref[...]).astype(jnp.bfloat16))                              # (TB, Hp) bf16
    out = (jnp.dot(h2, w3_ref[...], preferred_element_type=jnp.float32)
           + b3_ref[...])                                                  # (TB, Op) f32
    out_ref[...] = out.astype(out_ref.dtype)


def prepare_params(params):
    """One-time pack: pad feature dims to multiples of 128 (lane-dense), weights -> bf16.

    Returns (packed_params, out_size).  Call once; reuse the packed tuple for every
    forward call so no per-call padding / casting of weights hits HBM.
    """
    w1, b1, w2, b2, w3, b3 = params
    in_size, hid_size = w1.shape
    out_size = w3.shape[1]
    ip = _round_up(in_size, 128)
    hp = _round_up(hid_size, 128)
    op = _round_up(out_size, 128)

    # Zero padding is inert: padded hidden columns give tanh(0 + 0) = 0 and feed zero
    # weights downstream; padded output columns are sliced off in the wrapper.
    w1p = jnp.zeros((ip, hp), jnp.bfloat16).at[:in_size, :hid_size].set(
        w1.astype(jnp.bfloat16))
    b1p = jnp.zeros((1, hp), jnp.float32).at[:, :hid_size].set(
        b1.reshape(1, -1).astype(jnp.float32))
    w2p = jnp.zeros((hp, hp), jnp.bfloat16).at[:hid_size, :hid_size].set(
        w2.astype(jnp.bfloat16))
    b2p = jnp.zeros((1, hp), jnp.float32).at[:, :hid_size].set(
        b2.reshape(1, -1).astype(jnp.float32))
    w3p = jnp.zeros((hp, op), jnp.bfloat16).at[:hid_size, :out_size].set(
        w3.astype(jnp.bfloat16))
    b3p = jnp.zeros((1, op), jnp.float32).at[:, :out_size].set(
        b3.reshape(1, -1).astype(jnp.float32))
    packed = (w1p, b1p, w2p, b2p, w3p, b3p)
    return jax.tree_util.tree_map(jax.block_until_ready, packed), out_size


@functools.partial(jax.jit, static_argnames=("out_size", "block_batch", "out_dtype"))
def mlp_forward(x, packed_params, *, out_size, block_batch=512, out_dtype=jnp.float32):
    """x: any shape (B, ...); flattened to (B, -1) like the PyTorch x.view(B, -1)."""
    w1p, b1p, w2p, b2p, w3p, b3p = packed_params
    ip, hp = w1p.shape
    op = w3p.shape[1]

    batch = x.shape[0]
    x2d = x.reshape(batch, -1)
    in_size = x2d.shape[1]
    if x2d.dtype != jnp.bfloat16:
        x2d = x2d.astype(jnp.bfloat16)          # single cast, no f32 round-trip

    # --- batch tiling -------------------------------------------------------
    # Pad batch only to a multiple of 8, then split evenly over the minimal number of
    # tiles (>= 2 when batch >= 16 so "parallel" shards across both v7x TensorCores).
    # Pad waste is bounded by < 8 rows + tile rounding, not by a full tile.
    bp8 = _round_up(batch, 8)
    ntiles = pl.cdiv(bp8, block_batch)
    if bp8 >= 16:
        ntiles = max(ntiles, 2)
    tb = _round_up(pl.cdiv(bp8, ntiles), 8)
    ntiles = pl.cdiv(bp8, tb)
    bp = ntiles * tb

    pad_rows = bp - batch
    pad_cols = ip - in_size
    if pad_rows or pad_cols:
        xp = jnp.pad(x2d, ((0, pad_rows), (0, pad_cols)))
    else:
        xp = x2d

    # Single-buffer the never-refetched weights once they are big enough that default
    # double-buffering would pressure v7x's 64 MiB VMEM.
    weight_bytes = 2 * (ip * hp + hp * hp + hp * op)
    wspec_kw = {"pipeline_mode": pl.Buffered(1)} if weight_bytes > (8 << 20) else {}

    out_padded = pl.pallas_call(
        mlp_kernel,
        out_shape=jax.ShapeDtypeStruct((bp, op), out_dtype),
        grid_spec=pltpu.PrefetchScalarGridSpec(
            num_scalar_prefetch=0,
            grid=(ntiles,),
            in_specs=[
                # x: blocked over batch (double-buffered HBM prefetch across grid steps).
                pl.BlockSpec((tb, ip), lambda i: (i, 0)),
                # Weights / biases: constant block index -> VMEM-resident across steps.
                pl.BlockSpec((ip, hp), lambda i: (0, 0), **wspec_kw),
                pl.BlockSpec((1, hp), lambda i: (0, 0), **wspec_kw),
                pl.BlockSpec((hp, hp), lambda i: (0, 0), **wspec_kw),
                pl.BlockSpec((1, hp), lambda i: (0, 0), **wspec_kw),
                pl.BlockSpec((hp, op), lambda i: (0, 0), **wspec_kw),
                pl.BlockSpec((1, op), lambda i: (0, 0), **wspec_kw),
            ],
            out_specs=pl.BlockSpec((tb, op), lambda i: (i, 0)),
        ),
        compiler_params=pltpu.CompilerParams(
            # Batch axis is independent -> shard across both TCs on v7x (no-op elsewhere).
            dimension_semantics=("parallel",),
            vmem_limit_bytes=_pick_vmem_limit(),
        ),
    )(xp, w1p, b1p, w2p, b2p, w3p, b3p)

    # Aligned fast path: no extra output-sized HBM copy when nothing was padded.
    if bp == batch and op == out_size:
        return out_padded
    return out_padded[:batch, :out_size]


def init_params(key, input_size, hidden_size, output_size):
    """Deterministic init matching nn.Linear shapes (stored transposed: (in, out))."""
    ks = jax.random.split(key, 6)
    scale1 = 1.0 / jnp.sqrt(input_size)
    scale2 = 1.0 / jnp.sqrt(hidden_size)
    w1 = jax.random.uniform(ks[0], (input_size, hidden_size), jnp.float32, -scale1, scale1)
    b1 = jax.random.uniform(ks[1], (1, hidden_size), jnp.float32, -scale1, scale1)
    w2 = jax.random.uniform(ks[2], (hidden_size, hidden_size), jnp.float32, -scale2, scale2)
    b2 = jax.random.uniform(ks[3], (1, hidden_size), jnp.float32, -scale2, scale2)
    w3 = jax.random.uniform(ks[4], (hidden_size, output_size), jnp.float32, -scale2, scale2)
    b3 = jax.random.uniform(ks[5], (1, output_size), jnp.float32, -scale2, scale2)
    return (w1, b1, w2, b2, w3, b3)


if __name__ == "__main__":
    key = jax.random.PRNGKey(0)
    k_x, k_p = jax.random.split(key)

    batch = 2
    input_size = 64        # flattened (4, 16) feature map -> 64 inputs
    hidden_size = 32
    output_size = 10

    # Input given as (B, 4, 16); forward flattens to (B, 64) like x.view(x.size(0), -1).
    x = jax.random.normal(k_x, (batch, 4, 16), dtype=jnp.float32)
    params = init_params(k_p, input_size, hidden_size, output_size)

    # One-time weight packing (hoisted out of the per-call hot path).
    packed, out_size = prepare_params(params)

    out = mlp_forward(x, packed, out_size=out_size)
    out = jax.block_until_ready(out)

    # Reference check in plain JAX (f32 math); kernel uses bf16 MXU inputs with f32
    # accumulation and bf16 tanh, so allow bf16-level tolerance.
    w1, b1, w2, b2, w3, b3 = params
    x2d = x.reshape(batch, -1)
    ref = jnp.tanh(x2d @ w1 + b1)
    ref = jnp.tanh(ref @ w2 + b2)
    ref = ref @ w3 + b3
    assert out.shape == (batch, output_size)
    assert jnp.allclose(out, ref, atol=4e-2, rtol=4e-2), (
        f"max abs err = {jnp.max(jnp.abs(out - ref))}")

    print("KERNEL_OK")
</pallas_src>

<mosaic_0001>
module attributes {stable_mosaic.version = 11 : i64} {
  func.func @mlp_kernel(%arg0: i32, %arg1: memref<8x128xbf16, #tpu.memory_space<vmem>>, %arg2: memref<128x128xbf16, #tpu.memory_space<vmem>>, %arg3: memref<1x128xf32, #tpu.memory_space<vmem>>, %arg4: memref<128x128xbf16, #tpu.memory_space<vmem>>, %arg5: memref<1x128xf32, #tpu.memory_space<vmem>>, %arg6: memref<128x128xbf16, #tpu.memory_space<vmem>>, %arg7: memref<1x128xf32, #tpu.memory_space<vmem>>, %arg8: memref<8x128xf32, #tpu.memory_space<vmem>>) attributes {dimension_semantics = [#tpu.dimension_semantics<parallel>], iteration_bounds = array<i64: 1>, scalar_prefetch = 0 : i64, scratch_operands = 0 : i64, tpu.core_type = #tpu.core_type<tc>, window_params = [{transform_indices = @transform_0, window_bounds = array<i64: 8, 128>}, {pipeline_mode = #tpu.pipeline_mode<synchronous>, transform_indices = @transform_1, window_bounds = array<i64: 128, 128>}, {pipeline_mode = #tpu.pipeline_mode<synchronous>, transform_indices = @transform_2, window_bounds = array<i64: 1, 128>}, {pipeline_mode = #tpu.pipeline_mode<synchronous>, transform_indices = @transform_3, window_bounds = array<i64: 128, 128>}, {pipeline_mode = #tpu.pipeline_mode<synchronous>, transform_indices = @transform_4, window_bounds = array<i64: 1, 128>}, {pipeline_mode = #tpu.pipeline_mode<synchronous>, transform_indices = @transform_5, window_bounds = array<i64: 128, 128>}, {pipeline_mode = #tpu.pipeline_mode<synchronous>, transform_indices = @transform_6, window_bounds = array<i64: 1, 128>}, {transform_indices = @transform_7, window_bounds = array<i64: 8, 128>}]} {
    %c0 = arith.constant 0 : index
    %c0_0 = arith.constant 0 : index
    %0 = vector.load %arg1[%c0, %c0_0] : memref<8x128xbf16, #tpu.memory_space<vmem>>, vector<8x128xbf16>
    %c0_1 = arith.constant 0 : index
    %c0_2 = arith.constant 0 : index
    %1 = vector.load %arg2[%c0_1, %c0_2] : memref<128x128xbf16, #tpu.memory_space<vmem>>, vector<128x128xbf16>
    %cst = arith.constant dense<0.000000e+00> : vector<8x128xf32>
    %2 = tpu.matmul %0, %1, %cst {dimension_numbers = #tpu.dot_dimension_numbers<[1], [0], [0], [1], [0, 0, 1, 1], [], []>} : vector<8x128xbf16>, vector<128x128xbf16>, vector<8x128xf32> -> vector<8x128xf32>
    %c0_3 = arith.constant 0 : index
    %c0_4 = arith.constant 0 : index
    %3 = vector.load %arg3[%c0_3, %c0_4] : memref<1x128xf32, #tpu.memory_space<vmem>>, vector<1x128xf32>
    %4 = vector.broadcast %3 : vector<1x128xf32> to vector<8x128xf32>
    %5 = arith.addf %2, %4 : vector<8x128xf32>
    %6 = arith.truncf %5 : vector<8x128xf32> to vector<8x128xbf16>
    %7 = math.tanh %6 : vector<8x128xbf16>
    %c0_5 = arith.constant 0 : index
    %c0_6 = arith.constant 0 : index
    %8 = vector.load %arg4[%c0_5, %c0_6] : memref<128x128xbf16, #tpu.memory_space<vmem>>, vector<128x128xbf16>
    %cst_7 = arith.constant dense<0.000000e+00> : vector<8x128xf32>
    %9 = tpu.matmul %7, %8, %cst_7 {dimension_numbers = #tpu.dot_dimension_numbers<[1], [0], [0], [1], [0, 0, 1, 1], [], []>} : vector<8x128xbf16>, vector<128x128xbf16>, vector<8x128xf32> -> vector<8x128xf32>
    %c0_8 = arith.constant 0 : index
    %c0_9 = arith.constant 0 : index
    %10 = vector.load %arg5[%c0_8, %c0_9] : memref<1x128xf32, #tpu.memory_space<vmem>>, vector<1x128xf32>
    %11 = vector.broadcast %10 : vector<1x128xf32> to vector<8x128xf32>
    %12 = arith.addf %9, %11 : vector<8x128xf32>
    %13 = arith.truncf %12 : vector<8x128xf32> to vector<8x128xbf16>
    %14 = math.tanh %13 : vector<8x128xbf16>
    %c0_10 = arith.constant 0 : index
    %c0_11 = arith.constant 0 : index
    %15 = vector.load %arg6[%c0_10, %c0_11] : memref<128x128xbf16, #tpu.memory_space<vmem>>, vector<128x128xbf16>
    %cst_12 = arith.constant dense<0.000000e+00> : vector<8x128xf32>
    %16 = tpu.matmul %14, %15, %cst_12 {dimension_numbers = #tpu.dot_dimension_numbers<[1], [0], [0], [1], [0, 0, 1, 1], [], []>} : vector<8x128xbf16>, vector<128x128xbf16>, vector<8x128xf32> -> vector<8x128xf32>
    %c0_13 = arith.constant 0 : index
    %c0_14 = arith.constant 0 : index
    %17 = vector.load %arg7[%c0_13, %c0_14] : memref<1x128xf32, #tpu.memory_space<vmem>>, vector<1x128xf32>
    %18 = vector.broadcast %17 : vector<1x128xf32> to vector<8x128xf32>
    %19 = arith.addf %16, %18 : vector<8x128xf32>
    %c0_15 = arith.constant 0 : index
    %c0_16 = arith.constant 0 : index
    %20 = vector.load %arg8[%c0_15, %c0_16] : memref<8x128xf32, #tpu.memory_space<vmem>>, vector<8x128xf32>
    tpu.vector_store %arg8[%c0_15, %c0_16], %19 {strides = array<i32>} : memref<8x128xf32, #tpu.memory_space<vmem>>, vector<8x128xf32>,
    return
  }
  func.func @transform_0(%arg0: i32) -> (i32, i32) {
    %c0_i32 = arith.constant 0 : i32
    %c0_i32_0 = arith.constant 0 : i32
    return %arg0, %c0_i32 : i32, i32
  }
  func.func @transform_1(%arg0: i32) -> (i32, i32) {
    %c0_i32 = arith.constant 0 : i32
    %c0_i32_0 = arith.constant 0 : i32
    %c0_i32_1 = arith.constant 0 : i32
    return %c0_i32, %c0_i32_0 : i32, i32
  }
  func.func @transform_2(%arg0: i32) -> (i32, i32) {
    %c0_i32 = arith.constant 0 : i32
    %c0_i32_0 = arith.constant 0 : i32
    %c0_i32_1 = arith.constant 0 : i32
    return %c0_i32, %c0_i32_0 : i32, i32
  }
  func.func @transform_3(%arg0: i32) -> (i32, i32) {
    %c0_i32 = arith.constant 0 : i32
    %c0_i32_0 = arith.constant 0 : i32
    %c0_i32_1 = arith.constant 0 : i32
    return %c0_i32, %c0_i32_0 : i32, i32
  }
  func.func @transform_4(%arg0: i32) -> (i32, i32) {
    %c0_i32 = arith.constant 0 : i32
    %c0_i32_0 = arith.constant 0 : i32
    %c0_i32_1 = arith.constant 0 : i32
    return %c0_i32, %c0_i32_0 : i32, i32
  }
  func.func @transform_5(%arg0: i32) -> (i32, i32) {
    %c0_i32 = arith.constant 0 : i32
    %c0_i32_0 = arith.constant 0 : i32
    %c0_i32_1 = arith.constant 0 : i32
    return %c0_i32, %c0_i32_0 : i32, i32
  }
  func.func @transform_6(%arg0: i32) -> (i32, i32) {
    %c0_i32 = arith.constant 0 : i32
    %c0_i32_0 = arith.constant 0 : i32
    %c0_i32_1 = arith.constant 0 : i32
    return %c0_i32, %c0_i32_0 : i32, i32
  }
  func.func @transform_7(%arg0: i32) -> (i32, i32) {
    %c0_i32 = arith.constant 0 : i32
    %c0_i32_0 = arith.constant 0 : i32
    return %arg0, %c0_i32 : i32, i32
  }
}

</mosaic_0001>

<bundles_post_ra>
// kernel: mlp_forward.1
= control target key start
LH: loop header
LB: loop body
LE: loop exit
PB: predicated region body
PF: predicated region fallthrough
CT: control target
= control target key end

     0   :  { %12 = vsyncpa [#allocation3], 0  ;;  %s999_s0 = inlined_call_operand.hbm [shape: bf16[8,128], index: 0, kind: input, shape index: {}]   ;;  %s1000_s1 = inlined_call_operand.hbm [shape: bf16[128,128], index: 1, kind: input, shape index: {}]   ;;  %s1001_s2 = inlined_call_operand.hbm [shape: f32[1,128], index: 2, kind: input, shape index: {}]   ;;  %s1002_s3 = inlined_call_operand.hbm [shape: bf16[128,128], index: 3, kind: input, shape index: {}]   ;;  %s1003_s4 = inlined_call_operand.hbm [shape: f32[1,128], index: 4, kind: input, shape index: {}]   ;;  %s1004_s5 = inlined_call_operand.hbm [shape: bf16[128,128], index: 5, kind: input, shape index: {}]   ;;  %s1005_s6 = inlined_call_operand.hbm [shape: f32[1,128], index: 6, kind: input, shape index: {}]   ;;  %s1006_s7 = inlined_call_operand.hbm [shape: f32[8,128], index: 7, kind: output, shape index: {}]  }
   0x1   :  { %13 = vsyncpa [#allocation6], 0 }
   0x2   :  { %14 = vsyncpa [#allocation9], 0 }
   0x3   :  { %15 = vsyncpa [#allocation12], 0 }
   0x4   :  { %16 = vsyncpa [#allocation4], 0  ;;  %s812_s24 = smov [#allocation5]   ;;  %s626_s28 = scalar_lea.hbm %s1000_s1, 1024 }
   0x5   :  { %s32_s25 = sshll.u32 %s812_s24, 4  ;;  %p627_p0 = scmp.ne.s32.totalorder %s1000_s1, %s626_s28  ;;  %s33_s25 = int_to_ptr.vmem [resolvable:$true] %s32_s25 }
   0x6   :  { %p630_p1 = scmp.lt.u32.totalorder %s626_s28, %s1000_s1 }
   0x8   :  { %p632_p2 = pnand %p630_p1, %p627_p0 }
   0xa   :  { %635 = shalt.err (!%p632_p2)
}
   0xb   :  { %s636_s10 = scalar_lea.vmem %s33_s25, 1024  ;;  %p641_p4 = scmp.lt.s32.totalorder %s33_s25, %s33_s25 }
   0xc   :  { %p637_p3 = scmp.ne.s32.totalorder %s33_s25, %s636_s10  ;;  %p642_p5 = scmp.lt.s32.totalorder %s636_s10, %s636_s10 }
   0xe   :  { %p643_p6 = por %p642_p5, %p641_p4 }
  0x10   :  { %p644_p7 = pnand %p643_p6, %p637_p3 }
  0x12   :  { %647 = shalt.err (!%p644_p7)
}
  0x13   :  { %s813_s11 = smov 64   ;;  %s814_s12 = smov 4  }
  0x14   :  { %38 = dma.hbm_to_vmem [thread:$0]  %s1000_s1, 1024, %s33_s25, [#allocation6], %s813_s11, %s813_s11, %s814_s12  }
  0x15   :  { %s815_s15 = smov [#allocation8]   ;;  %s816_s17 = smov [#allocation11]  }
  0x16   :  { %s54_s16 = sshll.u32 %s815_s15, 4  ;;  %s76_s18 = sshll.u32 %s816_s17, 4  ;;  %s55_s16 = int_to_ptr.vmem [resolvable:$true] %s54_s16  ;;  %s77_s18 = int_to_ptr.vmem [resolvable:$true] %s76_s18 }
  0x17   :  { %s648_s21 = scalar_lea.hbm %s1002_s3, 1024 }
  0x18   :  { %p649_p8 = scmp.ne.s32.totalorder %s1002_s3, %s648_s21  ;;  %p652_p9 = scmp.lt.u32.totalorder %s648_s21, %s1002_s3 }
  0x1a   :  { %p654_p10 = pnand %p652_p9, %p649_p8 }
  0x1c   :  { %657 = shalt.err (!%p654_p10)
}
  0x1d   :  { %s658_s1 = scalar_lea.vmem %s55_s16, 1024  ;;  %p663_p12 = scmp.lt.s32.totalorder %s55_s16, %s55_s16 }
  0x1e   :  { %p659_p11 = scmp.ne.s32.totalorder %s55_s16, %s658_s1  ;;  %p664_p13 = scmp.lt.s32.totalorder %s658_s1, %s658_s1 }
  0x20   :  { %p665_p0 = por %p664_p13, %p663_p12 }
  0x22   :  { %p666_p1 = pnand %p665_p0, %p659_p11 }
  0x24   :  { %669 = shalt.err (!%p666_p1)
}
  0x25   :  { %60 = dma.hbm_to_vmem [thread:$0]  %s1002_s3, 1024, %s55_s16, [#allocation9], %s813_s11, %s813_s11, %s814_s12  }
  0x26   :  { %s670_s30 = scalar_lea.hbm %s1004_s5, 1024 }
  0x27   :  { %p671_p2 = scmp.ne.s32.totalorder %s1004_s5, %s670_s30  ;;  %p674_p3 = scmp.lt.u32.totalorder %s670_s30, %s1004_s5 }
  0x29   :  { %p676_p4 = pnand %p674_p3, %p671_p2 }
  0x2b   :  { %679 = shalt.err (!%p676_p4)
}
  0x2c   :  { %s680_s14 = scalar_lea.vmem %s77_s18, 1024  ;;  %p685_p6 = scmp.lt.s32.totalorder %s77_s18, %s77_s18 }
  0x2d   :  { %p681_p5 = scmp.ne.s32.totalorder %s77_s18, %s680_s14  ;;  %p686_p7 = scmp.lt.s32.totalorder %s680_s14, %s680_s14 }
  0x2f   :  { %p687_p8 = por %p686_p7, %p685_p6 }
  0x31   :  { %p688_p9 = pnand %p687_p8, %p681_p5 }
  0x33   :  { %691 = shalt.err (!%p688_p9)
}
  0x34   :  { %82 = dma.hbm_to_vmem [thread:$0]  %s1004_s5, 1024, %s77_s18, [#allocation12], %s813_s11, %s813_s11, %s814_s12  }
  0x35   :  { %s817_s16 = smov [#allocation2]   ;;  %s818_s19 = smov [#allocation7]  }
  0x36   :  { %s23_s17 = sshll.u32 %s817_s16, 4  ;;  %s45_s20 = sshll.u32 %s818_s19, 4  ;;  %s24_s17 = int_to_ptr.vmem [resolvable:$true] %s23_s17  ;;  %s46_s20 = int_to_ptr.vmem [resolvable:$true] %s45_s20 }
  0x37   :  { %s692_s23 = scalar_lea.hbm %s999_s0, 64 }
  0x38   :  { %p693_p10 = scmp.ne.s32.totalorder %s999_s0, %s692_s23  ;;  %p696_p11 = scmp.lt.u32.totalorder %s692_s23, %s999_s0 }
  0x3a   :  { %p698_p12 = pnand %p696_p11, %p693_p10 }
  0x3c   :  { %701 = shalt.err (!%p698_p12)
}
  0x3d   :  { %s702_s5 = scalar_lea.vmem %s24_s17, 64  ;;  %p707_p0 = scmp.lt.s32.totalorder %s24_s17, %s24_s17 }
  0x3e   :  { %p703_p13 = scmp.ne.s32.totalorder %s24_s17, %s702_s5  ;;  %p708_p1 = scmp.lt.s32.totalorder %s702_s5, %s702_s5 }
  0x40   :  { %p709_p2 = por %p708_p1, %p707_p0 }
  0x42   :  { %p710_p3 = pnand %p709_p2, %p703_p13 }
  0x44   :  { %713 = shalt.err (!%p710_p3)
}
  0x45   :  { %26 = dma.hbm_to_vmem [thread:$0]  %s999_s0, 64, %s24_s17, [#allocation3]  }
  0x46   :  { %s714_s28 = scalar_lea.hbm %s1001_s2, 16 }
  0x47   :  { %p715_p4 = scmp.ne.s32.totalorder %s1001_s2, %s714_s28  ;;  %p718_p5 = scmp.lt.u32.totalorder %s714_s28, %s1001_s2 }
  0x49   :  { %p720_p6 = pnand %p718_p5, %p715_p4 }
  0x4b   :  { %723 = shalt.err (!%p720_p6)
}
  0x4c   :  { %s724_s10 = scalar_lea.vmem %s46_s20, 16  ;;  %s728_s13 = scalar_lea.vmem %s46_s20, 32 }
  0x4d   :  { %p725_p7 = scmp.ne.s32.totalorder %s46_s20, %s724_s10  ;;  %p729_p8 = scmp.lt.s32.totalorder %s46_s20, %s46_s20 }
  0x4e   :  { %p730_p9 = scmp.lt.s32.totalorder %s728_s13, %s724_s10 }
  0x50   :  { %p731_p10 = por %p730_p9, %p729_p8 }
  0x52   :  { %p732_p11 = pnand %p731_p10, %p725_p7 }
  0x54   :  { %735 = shalt.err (!%p732_p11)
}
  0x55   :  { %48 = dma.hbm_to_vmem [thread:$0]  %s1001_s2, 16, %s46_s20, [#allocation6]  }
  0x56   :  { %s819_s3 = smov [#allocation10]   ;;  %s820_s16 = smov [#allocation13]  }
  0x57   :  { %s67_s15 = sshll.u32 %s819_s3, 4  ;;  %s89_s17 = sshll.u32 %s820_s16, 4  ;;  %s68_s15 = int_to_ptr.vmem [resolvable:$true] %s67_s15  ;;  %s90_s17 = int_to_ptr.vmem [resolvable:$true] %s89_s17 }
  0x58   :  { %s736_s22 = scalar_lea.hbm %s1003_s4, 16 }
  0x59   :  { %p737_p12 = scmp.ne.s32.totalorder %s1003_s4, %s736_s22  ;;  %p740_p13 = scmp.lt.u32.totalorder %s736_s22, %s1003_s4 }
  0x5b   :  { %p742_p0 = pnand %p740_p13, %p737_p12 }
  0x5d   :  { %745 = shalt.err (!%p742_p0)
}
  0x5e   :  { %s746_s2 = scalar_lea.vmem %s68_s15, 16  ;;  %s750_s20 = scalar_lea.vmem %s68_s15, 32 }
  0x5f   :  { %p747_p1 = scmp.ne.s32.totalorder %s68_s15, %s746_s2  ;;  %p751_p2 = scmp.lt.s32.totalorder %s68_s15, %s68_s15 }
  0x60   :  { %p752_p3 = scmp.lt.s32.totalorder %s750_s20, %s746_s2 }
  0x62   :  { %p753_p4 = por %p752_p3, %p751_p2 }
  0x64   :  { %p754_p5 = pnand %p753_p4, %p747_p1 }
  0x66   :  { %757 = shalt.err (!%p754_p5)
}
  0x67   :  { %70 = dma.hbm_to_vmem [thread:$0]  %s1003_s4, 16, %s68_s15, [#allocation9]  }
  0x68   :  { %s758_s18 = scalar_lea.hbm %s1005_s6, 16 }
  0x69   :  { %p759_p6 = scmp.ne.s32.totalorder %s1005_s6, %s758_s18  ;;  %p762_p7 = scmp.lt.u32.totalorder %s758_s18, %s1005_s6 }
  0x6b   :  { %p764_p8 = pnand %p762_p7, %p759_p6 }
  0x6d   :  { %767 = shalt.err (!%p764_p8)
}
  0x6e   :  { %s768_s8 = scalar_lea.vmem %s90_s17, 16  ;;  %s772_s9 = scalar_lea.vmem %s90_s17, 32 }
  0x6f   :  { %p769_p9 = scmp.ne.s32.totalorder %s90_s17, %s768_s8  ;;  %p773_p10 = scmp.lt.s32.totalorder %s90_s17, %s90_s17 }
  0x70   :  { %p774_p11 = scmp.lt.s32.totalorder %s772_s9, %s768_s8 }
  0x72   :  { %p775_p12 = por %p774_p11, %p773_p10 }
  0x74   :  { %p776_p13 = pnand %p775_p12, %p769_p9 }
  0x76   :  { %779 = shalt.err (!%p776_p13)
}
  0x77   :  { %92 = dma.hbm_to_vmem [thread:$0]  %s1005_s6, 16, %s90_s17, [#allocation12]  }
  0x78   :  { %802 = dma.done.wait [#allocation3], 64  }
  0x79   :  { %803 = vsyncadd [#allocation3], 4294967232 }
  0x7a   :  { %804 = dma.done.wait [#allocation6], 1040  }
  0x7b   :  { %805 = vsyncadd [#allocation6], 4294966256 }
  0x7c   :  { %806 = dma.done.wait [#allocation9], 1040  }
  0x7d   :  { %807 = vsyncadd [#allocation9], 4294966256 }
  0x7e   :  { %808 = dma.done.wait [#allocation12], 1040  }
  0x7f   :  { %809 = vsyncadd [#allocation12], 4294966256  ;;  %v821_v0 = vmov 0.0   ;;  %vm822_vm0 = vmmov 0   ;;  %v598_v1 = vld [vmem:[#allocation5] sm:$0xff]   ;;  %v599_v2 = vld [vmem:[#allocation5 + $0x8] sm:$0xff]  }
  0x80   :  { %526 = vmatprep.subr.bf16.mxu0 %v821_v0  ;;  %542 = vmatprep.mubr.msk.bf16.mxu0 %vm822_vm0, %v821_v0  ;;  %v600_v3 = vld [vmem:[#allocation5 + $0x10] sm:$0xff]   ;;  %v606_v4 = vld [vmem:[#allocation8] sm:$0xff]   ;;  %v601_v5 = vld [vmem:[#allocation5 + $0x18] sm:$0xff]   ;;  %s823_s6 = smov [#allocation14]  }
  0x81   :  { %546 = vmatprep.subr.bf16.mxu1 %v821_v0  ;;  %562 = vmatprep.mubr.msk.bf16.mxu1 %vm822_vm0, %v821_v0  ;;  %v607_v6 = vld [vmem:[#allocation8 + $0x8] sm:$0xff]   ;;  %v602_v7 = vld [vmem:[#allocation5 + $0x20] sm:$0xff]   ;;  %v608_v8 = vld [vmem:[#allocation8 + $0x10] sm:$0xff]   ;;  %s460_s13 = sshll.u32 %s823_s6, 4  ;;  %s461_s13 = int_to_ptr.vmem [resolvable:$true] %s460_s13 }
  0x82   :  { %527 = vmatpush3.bf16.msra.mxu0 %v598_v1  ;;  %547 = vmatpush3.bf16.msra.mxu1 %v606_v4  ;;  %v603_v9 = vld [vmem:[#allocation5 + $0x28] sm:$0xff]   ;;  %v609_v10 = vld [vmem:[#allocation8 + $0x18] sm:$0xff]   ;;  %v604_v11 = vld [vmem:[#allocation5 + $0x30] sm:$0xff]   ;;  %s780_s0 = scalar_lea.vmem %s461_s13, 128  ;;  %p785_p1 = scmp.lt.s32.totalorder %s461_s13, %s461_s13 }
  0x83   :  { %528 = vmatprep.subr.bf16.mxu0 %v821_v0  ;;  %548 = vmatprep.subr.bf16.mxu1 %v821_v0  ;;  %v605_v12 = vld [vmem:[#allocation5 + $0x38] sm:$0xff]   ;;  %v610_v14 = vld [vmem:[#allocation8 + $0x20] sm:$0xff]   ;;  %v611_v15 = vld [vmem:[#allocation8 + $0x28] sm:$0xff]   ;;  %p781_p0 = scmp.ne.s32.totalorder %s461_s13, %s780_s0  ;;  %p786_p2 = scmp.lt.s32.totalorder %s780_s0, %s780_s0 }
  0x84   :  { %v115_v13 = vld [vmem:[#allocation2] sm:$0xf]  ;;  %v612_v16 = vld [vmem:[#allocation8 + $0x30] sm:$0xff]   ;;  %v614_v18 = vld [vmem:[#allocation11] sm:$0xff]  }
  0x85   :  { %v613_v17 = vld [vmem:[#allocation8 + $0x38] sm:$0xff]   ;;  %v615_v19 = vld [vmem:[#allocation11 + $0x8] sm:$0xff]   ;;  %v618_v30 = vld [vmem:[#allocation11 + $0x20] sm:$0xff]   ;;  %p787_p3 = por %p786_p2, %p785_p1 }
  0x86   :  { %529 = vmatpush3.bf16.msra.mxu0 %v599_v2  ;;  %549 = vmatpush3.bf16.msra.mxu1 %v607_v6  ;;  %v616_v20 = vld [vmem:[#allocation11 + $0x10] sm:$0xff]   ;;  %v617_v21 = vld [vmem:[#allocation11 + $0x18] sm:$0xff]   ;;  %v619_v31 = vld [vmem:[#allocation11 + $0x28] sm:$0xff]  }
  0x87   :  { %530 = vmatprep.subr.bf16.mxu0 %v821_v0  ;;  %550 = vmatprep.subr.bf16.mxu1 %v821_v0  ;;  %v472_v22 = vld [vmem:[#allocation7] ss:$0 sm:$0xff]  ;;  %v620_v32 = vld [vmem:[#allocation11 + $0x30] sm:$0xff]   ;;  %v481_v34 = vld [vmem:[#allocation10] ss:$0 sm:$0xff]  ;;  %p788_p4 = pnand %p787_p3, %p781_p0 }
  0x88   :  { %v621_v33 = vld [vmem:[#allocation11 + $0x38] sm:$0xff]   ;;  %v490_v42 = vld [vmem:[#allocation13] ss:$0 sm:$0xff] }
  0x8a   :  { %531 = vmatpush3.bf16.msra.mxu0 %v600_v3  ;;  %551 = vmatpush3.bf16.msra.mxu1 %v608_v8 }
  0x8b   :  { %532 = vmatprep.subr.bf16.mxu0 %v821_v0  ;;  %552 = vmatprep.subr.bf16.mxu1 %v821_v0 }
  0x8e   :  { %533 = vmatpush3.bf16.msra.mxu0 %v601_v5  ;;  %553 = vmatpush3.bf16.msra.mxu1 %v609_v10 }
  0x8f   :  { %534 = vmatprep.subr.bf16.mxu0 %v821_v0  ;;  %554 = vmatprep.subr.bf16.mxu1 %v821_v0 }
  0x92   :  { %535 = vmatpush3.bf16.msra.mxu0 %v602_v7  ;;  %555 = vmatpush3.bf16.msra.mxu1 %v610_v14 }
  0x93   :  { %536 = vmatprep.subr.bf16.mxu0 %v821_v0  ;;  %556 = vmatprep.subr.bf16.mxu1 %v821_v0 }
  0x96   :  { %537 = vmatpush3.bf16.msra.mxu0 %v603_v9  ;;  %557 = vmatpush3.bf16.msra.mxu1 %v611_v15 }
  0x97   :  { %538 = vmatprep.subr.bf16.mxu0 %v821_v0  ;;  %558 = vmatprep.subr.bf16.mxu1 %v821_v0 }
  0x9a   :  { %539 = vmatpush3.bf16.msra.mxu0 %v604_v11  ;;  %559 = vmatpush3.bf16.msra.mxu1 %v612_v16 }
  0x9b   :  { %540 = vmatprep.subr.bf16.mxu0 %v821_v0  ;;  %560 = vmatprep.subr.bf16.mxu1 %v821_v0 }
  0x9e   :  { %541 = vmatpush3.bf16.msra.mxu0 %v605_v12  ;;  %561 = vmatpush3.bf16.msra.mxu1 %v613_v17 }
  0x9f   :  { %566 = vmatprep.subr.bf16.mxu0 %v821_v0 }
  0xa1   :  { %543 = vmatmul.mubr.bf16.vlgmr.msra.gmra.mrb[0].mxu0 %v115_v13 }
  0xa2   :  { %582 = vmatprep.mubr.msk.bf16.mxu0 %vm822_vm0, %v821_v0  ;;  %567 = vmatpush3.bf16.msra.mxu0 %v614_v18 }
  0xa3   :  { %568 = vmatprep.subr.bf16.mxu0 %v821_v0 }
  0xa6   :  { %569 = vmatpush3.bf16.msra.mxu0 %v615_v19 }
  0xa7   :  { %570 = vmatprep.subr.bf16.mxu0 %v821_v0 }
  0xaa   :  { %571 = vmatpush3.bf16.msra.mxu0 %v616_v20 }
  0xab   :  { %572 = vmatprep.subr.bf16.mxu0 %v821_v0 }
  0xae   :  { %573 = vmatpush3.bf16.msra.mxu0 %v617_v21 }
  0xaf   :  { %574 = vmatprep.subr.bf16.mxu0 %v821_v0 }
  0xb2   :  { %575 = vmatpush3.bf16.msra.mxu0 %v618_v30 }
  0xb3   :  { %576 = vmatprep.subr.bf16.mxu0 %v821_v0 }
  0xb6   :  { %577 = vmatpush3.bf16.msra.mxu0 %v619_v31 }
  0xb7   :  { %578 = vmatprep.subr.bf16.mxu0 %v821_v0 }
  0xba   :  { %579 = vmatpush3.bf16.msra.mxu0 %v620_v32 }
  0xbb   :  { %580 = vmatprep.subr.bf16.mxu0 %v821_v0 }
  0xbe   :  { %581 = vmatpush3.bf16.msra.mxu0 %v621_v33 }
 0x174   :  { %v221_v23 = vpop.f32.mrb[0].mxu0 }
 0x175   :  { %v222_v24 = vadd.f32 %v472_v22, %v221_v23  ;;  %v544_v25 = vpop.f32.mrb[1].mxu0 }
 0x176   :  { %v224_v26 = vpop.f32.mrb[2].mxu0 }
 0x177   :  { %v227_v27 = vpack.c.bf16 %v222_v24, %v222_v24  ;;  %v545_v28 = vpop.f32.mrb[3].mxu0 }
 0x179   :  { %622 = vtanh.bf16 %v227_v27 }
 0x184   :  { %v623_v29 = vpop.eup %622 }
 0x185   :  { %563 = vmatmul.mubr.bf16.vlgmr.msra.gmra.mrb[0].mxu1 %v623_v29 }
 0x258   :  { %v334_v35 = vpop.f32.mrb[0].mxu1 }
 0x259   :  { %v335_v36 = vadd.f32 %v481_v34, %v334_v35  ;;  %v564_v37 = vpop.f32.mrb[1].mxu1 }
 0x25a   :  { %v337_v38 = vpop.f32.mrb[2].mxu1 }
 0x25b   :  { %v340_v39 = vpack.c.bf16 %v335_v36, %v335_v36  ;;  %v565_v40 = vpop.f32.mrb[3].mxu1 }
 0x25d   :  { %624 = vtanh.bf16 %v340_v39 }
 0x268   :  { %v625_v41 = vpop.eup %624 }
 0x269   :  { %583 = vmatmul.mubr.bf16.vlgmr.msra.gmra.mrb[4].mxu0 %v625_v41 }
 0x33c   :  { %v447_v43 = vpop.f32.mrb[4].mxu0 }
 0x33d   :  { %v448_v44 = vadd.f32 %v490_v42, %v447_v43  ;;  %v584_v45 = vpop.f32.mrb[5].mxu0 }
 0x33e   :  { %v450_v46 = vpop.f32.mrb[6].mxu0 }
 0x33f   :  { %453 = vst [vmem:[#allocation14] sm:$0xff] %v448_v44  ;;  %v585_v47 = vpop.f32.mrb[7].mxu0 }
 0x340   :  { %791 = shalt.err (!%p788_p4)
}
 0x341   :  { %s792_s15 = scalar_lea.hbm %s1006_s7, 128 }
 0x342   :  { %p793_p5 = scmp.ne.s32.totalorder %s1006_s7, %s792_s15  ;;  %p796_p6 = scmp.lt.u32.totalorder %s792_s15, %s1006_s7 }
 0x344   :  { %p798_p7 = pnand %p796_p6, %p793_p5 }
 0x346   :  { %801 = shalt.err (!%p798_p7)
}
 0x347   :  { %463 = dma.vmem_to_hbm [thread:$0]  %s461_s13, 128, %s1006_s7, [#allocation4]  }
 0x348   :  { %810 = dma.done.wait [#allocation4], 128  }
 0x349   :  { %811 = vsyncadd [#allocation4], 4294967168 }
 0x34a   :  { %467 = vsyncpa [#allocation3], 1 }
 0x34b   :  { %468 = vsyncpa [#allocation6], 1 }
 0x34c   :  { %469 = vsyncpa [#allocation9], 1 }
 0x34d   :  { %470 = vsyncpa [#allocation12], 1 }
 0x34e   :  { %471 = vsyncpa [#allocation4], 1 }

</bundles_post_ra>
